<compile_context>
chip_gen: v7x
topology: tpu7x:2x2x1
jax: 0.10.0
libtpu: 0.0.40
codegen_flags: <defaults>
</compile_context>

<pallas_src>
import jax
import jax.numpy as jnp
from jax.experimental import pallas as pl
from jax.experimental.pallas import tpu as pltpu

EPS = 1e-5      # nn.BatchNorm2d default eps
TM = 256        # M tile (lane dim of activations / GEMM output)
TK = 128        # K tile (GEMM reduction)


def _rup(x, m):
    return (x + m - 1) // m * m


def _cparams(dims):
    return pltpu.CompilerParams(
        dimension_semantics=dims,
        vmem_limit_bytes=32 * 1024 * 1024,   # explicit scoped VMEM budget
    )


# ---------------------------------------------------------------------------
# Kernel 1: conv-as-GEMM (lane-dense) with fused per-channel BN partial stats
#   W: (Cout, Kp) bf16, X: (Kp, Mp) bf16  ->  Y = W @ X : (Cout, Mp) f32
#   grid = (Mp//tm, Kp//tk);  K axis is the reduction ("arbitrary") axis.
# ---------------------------------------------------------------------------
def conv_gemm_stats_kernel(w_ref, x_ref, y_ref, s1_ref, s2_ref, acc_ref):
    ki = pl.program_id(1)

    @pl.when(ki == 0)
    def _():
        acc_ref[...] = jnp.zeros_like(acc_ref)

    acc_ref[...] += jnp.dot(w_ref[...], x_ref[...],
                            preferred_element_type=jnp.float32)

    @pl.when(ki == pl.num_programs(1) - 1)
    def _():
        acc = acc_ref[...]
        y_ref[...] = acc
        # per-channel partial sums for this M tile (padded M columns are 0)
        s1_ref[0] = jnp.sum(acc, axis=-1, keepdims=True)
        s2_ref[0] = jnp.sum(acc * acc, axis=-1, keepdims=True)


def pallas_conv_gemm(w2, x2, cout, kp, mp, tm, tk):
    m_tiles = mp // tm
    k_tiles = kp // tk
    return pl.pallas_call(
        conv_gemm_stats_kernel,
        out_shape=(
            jax.ShapeDtypeStruct((cout, mp), jnp.float32),
            jax.ShapeDtypeStruct((m_tiles, cout, 1), jnp.float32),
            jax.ShapeDtypeStruct((m_tiles, cout, 1), jnp.float32),
        ),
        grid=(m_tiles, k_tiles),
        in_specs=[
            pl.BlockSpec((cout, tk), lambda mi, ki: (0, ki)),
            pl.BlockSpec((tk, tm), lambda mi, ki: (ki, mi)),
        ],
        out_specs=(
            pl.BlockSpec((cout, tm), lambda mi, ki: (0, mi)),
            pl.BlockSpec((1, cout, 1), lambda mi, ki: (mi, 0, 0)),
            pl.BlockSpec((1, cout, 1), lambda mi, ki: (mi, 0, 0)),
        ),
        scratch_shapes=[pltpu.VMEM((cout, tm), jnp.float32)],
        compiler_params=_cparams(("parallel", "arbitrary")),
    )(w2, x2)


# ---------------------------------------------------------------------------
# Kernels 2-4: fused BN-apply (+ residual) + ReLU, tiled over M, bf16 output
#   y : (C, Mp) f32 conv output ; scale/shift : (C, 1) f32 ; r : residual
# ---------------------------------------------------------------------------
def bn_relu_kernel(y_ref, s_ref, t_ref, o_ref):
    o_ref[...] = jnp.maximum(
        y_ref[...] * s_ref[...] + t_ref[...], 0.0).astype(o_ref.dtype)


def bn_add_relu_kernel(y_ref, s_ref, t_ref, r_ref, o_ref):
    v = y_ref[...] * s_ref[...] + t_ref[...] + r_ref[...].astype(jnp.float32)
    o_ref[...] = jnp.maximum(v, 0.0).astype(o_ref.dtype)


def bn_add_bn_relu_kernel(y_ref, sy_ref, ty_ref, r_ref, sr_ref, tr_ref, o_ref):
    v = (y_ref[...] * sy_ref[...] + ty_ref[...]
         + r_ref[...] * sr_ref[...] + tr_ref[...])
    o_ref[...] = jnp.maximum(v, 0.0).astype(o_ref.dtype)


def _mslab_spec(c, tm):
    return pl.BlockSpec((c, tm), lambda mi: (0, mi))


def _cvec_spec(c):
    return pl.BlockSpec((c, 1), lambda mi: (0, 0))


def pallas_bn_relu(y, scale, shift, tm):
    c, mp = y.shape
    return pl.pallas_call(
        bn_relu_kernel,
        out_shape=jax.ShapeDtypeStruct((c, mp), jnp.bfloat16),
        grid=(mp // tm,),
        in_specs=[_mslab_spec(c, tm), _cvec_spec(c), _cvec_spec(c)],
        out_specs=_mslab_spec(c, tm),
        compiler_params=_cparams(("parallel",)),
    )(y, scale, shift)


def pallas_bn_add_relu(y, scale, shift, r, tm):
    c, mp = y.shape
    return pl.pallas_call(
        bn_add_relu_kernel,
        out_shape=jax.ShapeDtypeStruct((c, mp), jnp.bfloat16),
        grid=(mp // tm,),
        in_specs=[_mslab_spec(c, tm), _cvec_spec(c), _cvec_spec(c),
                  _mslab_spec(c, tm)],
        out_specs=_mslab_spec(c, tm),
        compiler_params=_cparams(("parallel",)),
    )(y, scale, shift, r)


def pallas_bn_add_bn_relu(y, sy, ty, r, sr, tr, tm):
    c, mp = y.shape
    return pl.pallas_call(
        bn_add_bn_relu_kernel,
        out_shape=jax.ShapeDtypeStruct((c, mp), jnp.bfloat16),
        grid=(mp // tm,),
        in_specs=[_mslab_spec(c, tm), _cvec_spec(c), _cvec_spec(c),
                  _mslab_spec(c, tm), _cvec_spec(c), _cvec_spec(c)],
        out_specs=_mslab_spec(c, tm),
        compiler_params=_cparams(("parallel",)),
    )(y, sy, ty, r, sr, tr)


# ---------------------------------------------------------------------------
# Kernel 5: global average pool + Linear head
#   x: (C, N, H*W) bf16 ; w: (num_classes, C) f32 ; b: (num_classes, 1)
#   out: (num_classes, N) f32   (transposed back in the wrapper)
# ---------------------------------------------------------------------------
def head_kernel(x_ref, w_ref, b_ref, o_ref):
    pooled = jnp.mean(x_ref[...].astype(jnp.float32), axis=-1)   # (C, N)
    o_ref[...] = jnp.dot(w_ref[...], pooled,
                         preferred_element_type=jnp.float32) + b_ref[...]


def pallas_head(x_cnp, w, b):
    c, n, hw = x_cnp.shape
    nc = w.shape[0]
    out_t = pl.pallas_call(
        head_kernel,
        out_shape=jax.ShapeDtypeStruct((nc, n), jnp.float32),
        grid=(1,),
        in_specs=[
            pl.BlockSpec((c, n, hw), lambda i: (0, 0, 0)),
            pl.BlockSpec((nc, c), lambda i: (0, 0)),
            pl.BlockSpec((nc, 1), lambda i: (0, 0)),
        ],
        out_specs=pl.BlockSpec((nc, n), lambda i: (0, 0)),
        compiler_params=_cparams(("arbitrary",)),
    )(x_cnp, w, b.reshape(nc, 1))
    return out_t.T


# ---------------------------------------------------------------------------
# Conv2d (bias=False) via transposed im2col (XLA glue, bf16) + tiled GEMM
# ---------------------------------------------------------------------------
def conv2d_bn_stats(a, w_hwio, stride, padding):
    """a: (Cin, N, H, W) activation. Returns f32 conv output (Cout, Mp),
    per-M-tile channel sum / sumsq partials, and geometry dict."""
    cin, n, h, w = a.shape
    kh, kw, _, cout = w_hwio.shape
    ho = (h + 2 * padding - kh) // stride + 1
    wo = (w + 2 * padding - kw) // stride + 1
    m = n * ho * wo
    k = kh * kw * cin

    ap = a
    if padding > 0:
        ap = jnp.pad(a, ((0, 0), (0, 0), (padding, padding), (padding, padding)))
    taps = []
    for i in range(kh):
        for j in range(kw):
            taps.append(ap[:, :, i:i + stride * ho:stride,
                           j:j + stride * wo:stride])          # (Cin,N,Ho,Wo)
    x2 = jnp.concatenate(taps, axis=0).reshape(k, m)            # (K, M)
    # TODO(synk): fold the kh*kw taps into the GEMM reduction grid (strided
    # window index_map) instead of materializing the (K, M) im2col slab.

    tm = min(TM, _rup(m, 128))
    mp = _rup(m, tm)
    kp = _rup(k, TK)
    x2 = jnp.pad(x2, ((0, kp - k), (0, mp - m))).astype(jnp.bfloat16)
    w2 = jnp.transpose(w_hwio, (3, 0, 1, 2)).reshape(cout, k)
    w2 = jnp.pad(w2, ((0, 0), (0, kp - k))).astype(jnp.bfloat16)

    y, s1, s2 = pallas_conv_gemm(w2, x2, cout, kp, mp, tm, TK)
    geom = dict(n=n, ho=ho, wo=wo, m=m, mp=mp, tm=tm, cout=cout)
    return y, s1, s2, geom


def bn_scale_shift(s1, s2, gamma, beta, m_true):
    """Fold BN (training-mode batch stats) into per-channel scale/shift.
    Zero-padded M columns contribute 0 to sums, so dividing by the true M
    gives the exact batch mean / biased variance."""
    tot = jnp.sum(s1, axis=0)[:, 0]
    tot2 = jnp.sum(s2, axis=0)[:, 0]
    mean = tot / m_true
    var = jnp.maximum(tot2 / m_true - mean * mean, 0.0)
    scale = gamma * jax.lax.rsqrt(var + EPS)
    shift = beta - mean * scale
    return scale.reshape(-1, 1), shift.reshape(-1, 1)


# ---------------------------------------------------------------------------
# Parameter initialization (deterministic, shapes match the PyTorch module)
# ---------------------------------------------------------------------------
def _conv_w(key, kh, kw, cin, cout):
    return 0.1 * jax.random.normal(key, (kh, kw, cin, cout), jnp.float32)


def _bn_init(key, c):
    k1, k2 = jax.random.split(key)
    gamma = 1.0 + 0.1 * jax.random.normal(k1, (c,), jnp.float32)
    beta = 0.1 * jax.random.normal(k2, (c,), jnp.float32)
    return gamma, beta


def make_block_params(key, in_planes, planes, stride):
    keys = jax.random.split(key, 6)
    p = {"stride": stride}
    p["conv1_w"] = _conv_w(keys[0], 3, 3, in_planes, planes)
    p["bn1_g"], p["bn1_b"] = _bn_init(keys[1], planes)
    p["conv2_w"] = _conv_w(keys[2], 3, 3, planes, planes)
    p["bn2_g"], p["bn2_b"] = _bn_init(keys[3], planes)
    if stride != 1 or in_planes != planes:       # BasicBlock.expansion == 1
        p["sc_w"] = _conv_w(keys[4], 1, 1, in_planes, planes)
        p["sc_bn_g"], p["sc_bn_b"] = _bn_init(keys[5], planes)
    return p, planes


def init_resnet_params(key, num_blocks=(1, 1, 1), num_classes=10):
    keys = jax.random.split(key, 7)
    params = {}
    params["conv1_w"] = _conv_w(keys[0], 3, 3, 3, 16)
    params["bn1_g"], params["bn1_b"] = _bn_init(keys[1], 16)
    in_planes = 16
    for li, (planes, nblk, stride0) in enumerate(
            zip((16, 32, 64), num_blocks, (1, 2, 2))):
        blocks = []
        bkeys = jax.random.split(keys[2 + li], nblk)
        strides = [stride0] + [1] * (nblk - 1)
        for bk, s in zip(bkeys, strides):
            bp, in_planes = make_block_params(bk, in_planes, planes, s)
            blocks.append(bp)
        params[f"layer{li + 1}"] = blocks
    params["fc_w"] = 0.1 * jax.random.normal(keys[5], (num_classes, 64), jnp.float32)
    params["fc_b"] = 0.1 * jax.random.normal(keys[6], (num_classes,), jnp.float32)
    return params


# ---------------------------------------------------------------------------
# Forward pass (matches ResNet.forward with BasicBlock)
# ---------------------------------------------------------------------------
def conv_bn_relu(a, w_hwio, gamma, beta, stride, padding):
    y, s1, s2, g = conv2d_bn_stats(a, w_hwio, stride, padding)
    scale, shift = bn_scale_shift(s1, s2, gamma, beta, g["m"])
    h = pallas_bn_relu(y, scale, shift, g["tm"])
    return h[:, :g["m"]].reshape(g["cout"], g["n"], g["ho"], g["wo"])


def basic_block_forward(a, p):
    # a: (Cin, N, H, W) bf16 activation
    cin, n, h, w = a.shape
    stride = p["stride"]
    # out = relu(bn1(conv1(x)))
    h1 = conv_bn_relu(a, p["conv1_w"], p["bn1_g"], p["bn1_b"], stride, 1)
    # out = bn2(conv2(out)) ; out += shortcut(x) ; out = relu(out)
    y2, s21, s22, g2 = conv2d_bn_stats(h1, p["conv2_w"], 1, 1)
    sc2, sh2 = bn_scale_shift(s21, s22, p["bn2_g"], p["bn2_b"], g2["m"])
    if "sc_w" in p:
        ys, ss1, ss2, gs = conv2d_bn_stats(a, p["sc_w"], stride, 0)
        assert ys.shape == y2.shape
        scs, shs = bn_scale_shift(ss1, ss2, p["sc_bn_g"], p["sc_bn_b"], gs["m"])
        out = pallas_bn_add_bn_relu(y2, sc2, sh2, ys, scs, shs, g2["tm"])
    else:
        r = a.reshape(cin, n * h * w)
        r = jnp.pad(r, ((0, 0), (0, g2["mp"] - n * h * w))).astype(jnp.bfloat16)
        out = pallas_bn_add_relu(y2, sc2, sh2, r, g2["tm"])
    return out[:, :g2["m"]].reshape(g2["cout"], g2["n"], g2["ho"], g2["wo"])


def resnet_forward(params, x_nchw):
    # NCHW -> (C, N, H, W): channel-major so the large N*H*W axis maps to the
    # 128-lane dim of every slab (lane-dense loads/stores).
    a = jnp.transpose(x_nchw.astype(jnp.float32), (1, 0, 2, 3))
    # stem: relu(bn1(conv1(x)))
    a = conv_bn_relu(a, params["conv1_w"], params["bn1_g"], params["bn1_b"], 1, 1)
    # residual stages
    for layer in ("layer1", "layer2", "layer3"):
        for bp in params[layer]:
            a = basic_block_forward(a, bp)
    # global avg pool over full spatial extent + linear head (fused kernel)
    c, n, ho, wo = a.shape
    return pallas_head(a.reshape(c, n, ho * wo), params["fc_w"], params["fc_b"])


# ---------------------------------------------------------------------------
if __name__ == "__main__":
    key = jax.random.PRNGKey(0)
    k_par, k_inp = jax.random.split(key)
    # num_blocks=(1,1,1): exercises a stride-1 identity block and stride-2
    # projection-shortcut blocks, exactly the structure _make_layer builds.
    params = init_resnet_params(k_par, num_blocks=(1, 1, 1), num_classes=10)
    x = jax.random.normal(k_inp, (2, 3, 16, 16), jnp.float32)   # small NCHW input
    logits = resnet_forward(params, x)
    jax.block_until_ready(logits)
    assert logits.shape == (2, 10), logits.shape
    assert bool(jnp.all(jnp.isfinite(logits)))
    print("KERNEL_OK")
</pallas_src>

<mosaic_0001>
module attributes {stable_mosaic.version = 11 : i64} {
  func.func @conv_gemm_stats_kernel(%arg0: i32, %arg1: i32, %arg2: memref<16x128xbf16, #tpu.memory_space<vmem>>, %arg3: memref<128x256xbf16, #tpu.memory_space<vmem>>, %arg4: memref<16x256xf32, #tpu.memory_space<vmem>>, %arg5: memref<1x16x1xf32, #tpu.memory_space<vmem>>, %arg6: memref<1x16x1xf32, #tpu.memory_space<vmem>>, %arg7: memref<16x256xf32, #tpu.memory_space<vmem>>) attributes {dimension_semantics = [#tpu.dimension_semantics<parallel>, #tpu.dimension_semantics<arbitrary>], iteration_bounds = array<i64: 2, 1>, scalar_prefetch = 0 : i64, scratch_operands = 1 : i64, tpu.core_type = #tpu.core_type<tc>, window_params = [{transform_indices = @transform_0, window_bounds = array<i64: 16, 128>}, {transform_indices = @transform_1, window_bounds = array<i64: 128, 256>}, {transform_indices = @transform_2, window_bounds = array<i64: 16, 256>}, {transform_indices = @transform_3, window_bounds = array<i64: 1, 16, 1>}, {transform_indices = @transform_4, window_bounds = array<i64: 1, 16, 1>}]} {
    %c0_i32 = arith.constant 0 : i32
    %0 = arith.cmpi eq, %arg1, %c0_i32 : i32
    %1 = arith.extui %0 : i1 to i32
    %c0_i32_0 = arith.constant 0 : i32
    %2 = arith.cmpi ne, %1, %c0_i32_0 : i32
    scf.if %2 {
      %cst_10 = arith.constant 0.000000e+00 : f32
      %12 = vector.broadcast %cst_10 : f32 to vector<16x256xf32>
      %c0_11 = arith.constant 0 : index
      %c0_12 = arith.constant 0 : index
      %13 = vector.load %arg7[%c0_11, %c0_12] : memref<16x256xf32, #tpu.memory_space<vmem>>, vector<16x256xf32>
      tpu.vector_store %arg7[%c0_11, %c0_12], %12 {strides = array<i32>} : memref<16x256xf32, #tpu.memory_space<vmem>>, vector<16x256xf32>,
    } else {
    }
    %c0 = arith.constant 0 : index
    %c0_1 = arith.constant 0 : index
    %3 = vector.load %arg7[%c0, %c0_1] : memref<16x256xf32, #tpu.memory_space<vmem>>, vector<16x256xf32>
    %c0_2 = arith.constant 0 : index
    %c0_3 = arith.constant 0 : index
    %4 = vector.load %arg2[%c0_2, %c0_3] : memref<16x128xbf16, #tpu.memory_space<vmem>>, vector<16x128xbf16>
    %c0_4 = arith.constant 0 : index
    %c0_5 = arith.constant 0 : index
    %5 = vector.load %arg3[%c0_4, %c0_5] : memref<128x256xbf16, #tpu.memory_space<vmem>>, vector<128x256xbf16>
    %cst = arith.constant dense<0.000000e+00> : vector<16x256xf32>
    %6 = tpu.matmul %4, %5, %cst {dimension_numbers = #tpu.dot_dimension_numbers<[1], [0], [0], [1], [0, 0, 1, 1], [], []>} : vector<16x128xbf16>, vector<128x256xbf16>, vector<16x256xf32> -> vector<16x256xf32>
    %7 = arith.addf %3, %6 : vector<16x256xf32>
    %c0_6 = arith.constant 0 : index
    %c0_7 = arith.constant 0 : index
    %8 = vector.load %arg7[%c0_6, %c0_7] : memref<16x256xf32, #tpu.memory_space<vmem>>, vector<16x256xf32>
    tpu.vector_store %arg7[%c0_6, %c0_7], %7 {strides = array<i32>} : memref<16x256xf32, #tpu.memory_space<vmem>>, vector<16x256xf32>,
    %c0_i32_8 = arith.constant 0 : i32
    %9 = arith.cmpi eq, %arg1, %c0_i32_8 : i32
    %10 = arith.extui %9 : i1 to i32
    %c0_i32_9 = arith.constant 0 : i32
    %11 = arith.cmpi ne, %10, %c0_i32_9 : i32
    scf.if %11 {
      %c0_10 = arith.constant 0 : index
      %c0_11 = arith.constant 0 : index
      %12 = vector.load %arg7[%c0_10, %c0_11] : memref<16x256xf32, #tpu.memory_space<vmem>>, vector<16x256xf32>
      %c0_12 = arith.constant 0 : index
      %c0_13 = arith.constant 0 : index
      %13 = vector.load %arg4[%c0_12, %c0_13] : memref<16x256xf32, #tpu.memory_space<vmem>>, vector<16x256xf32>
      tpu.vector_store %arg4[%c0_12, %c0_13], %12 {strides = array<i32>} : memref<16x256xf32, #tpu.memory_space<vmem>>, vector<16x256xf32>,
      %cst_14 = arith.constant dense<0.000000e+00> : vector<16xf32>
      %14 = vector.multi_reduction <add>, %12, %cst_14 [1] : vector<16x256xf32> to vector<16xf32>
      %15 = vector.shape_cast %14 : vector<16xf32> to vector<16x1xf32>
      %c0_15 = arith.constant 0 : index
      %c0_16 = arith.constant 0 : index
      %c0_17 = arith.constant 0 : index
      %16 = vector.load %arg5[%c0_15, %c0_16, %c0_17] : memref<1x16x1xf32, #tpu.memory_space<vmem>>, vector<1x16x1xf32>
      %17 = vector.shape_cast %16 : vector<1x16x1xf32> to vector<16x1xf32>
      %18 = vector.shape_cast %15 : vector<16x1xf32> to vector<1x16x1xf32>
      tpu.vector_store %arg5[%c0_15, %c0_16, %c0_17], %18 {strides = array<i32>} : memref<1x16x1xf32, #tpu.memory_space<vmem>>, vector<1x16x1xf32>,
      %19 = arith.mulf %12, %12 : vector<16x256xf32>
      %cst_18 = arith.constant dense<0.000000e+00> : vector<16xf32>
      %20 = vector.multi_reduction <add>, %19, %cst_18 [1] : vector<16x256xf32> to vector<16xf32>
      %21 = vector.shape_cast %20 : vector<16xf32> to vector<16x1xf32>
      %c0_19 = arith.constant 0 : index
      %c0_20 = arith.constant 0 : index
      %c0_21 = arith.constant 0 : index
      %22 = vector.load %arg6[%c0_19, %c0_20, %c0_21] : memref<1x16x1xf32, #tpu.memory_space<vmem>>, vector<1x16x1xf32>
      %23 = vector.shape_cast %22 : vector<1x16x1xf32> to vector<16x1xf32>
      %24 = vector.shape_cast %21 : vector<16x1xf32> to vector<1x16x1xf32>
      tpu.vector_store %arg6[%c0_19, %c0_20, %c0_21], %24 {strides = array<i32>} : memref<1x16x1xf32, #tpu.memory_space<vmem>>, vector<1x16x1xf32>,
    } else {
    }
    return
  }
  func.func @transform_0(%arg0: i32, %arg1: i32) -> (i32, i32) {
    %c0_i32 = arith.constant 0 : i32
    %c0_i32_0 = arith.constant 0 : i32
    return %c0_i32, %arg1 : i32, i32
  }
  func.func @transform_1(%arg0: i32, %arg1: i32) -> (i32, i32) {
    %c0_i32 = arith.constant 0 : i32
    return %arg1, %arg0 : i32, i32
  }
  func.func @transform_2(%arg0: i32, %arg1: i32) -> (i32, i32) {
    %c0_i32 = arith.constant 0 : i32
    %c0_i32_0 = arith.constant 0 : i32
    return %c0_i32, %arg0 : i32, i32
  }
  func.func @transform_3(%arg0: i32, %arg1: i32) -> (i32, i32, i32) {
    %c0_i32 = arith.constant 0 : i32
    %c0_i32_0 = arith.constant 0 : i32
    %c0_i32_1 = arith.constant 0 : i32
    return %arg0, %c0_i32, %c0_i32_0 : i32, i32, i32
  }
  func.func @transform_4(%arg0: i32, %arg1: i32) -> (i32, i32, i32) {
    %c0_i32 = arith.constant 0 : i32
    %c0_i32_0 = arith.constant 0 : i32
    %c0_i32_1 = arith.constant 0 : i32
    return %arg0, %c0_i32, %c0_i32_0 : i32, i32, i32
  }
}

</mosaic_0001>

<bundles_post_ra>
// kernel: tpu_custom_call.1
= control target key start
LH: loop header
LB: loop body
LE: loop exit
PB: predicated region body
PF: predicated region fallthrough
CT: control target
= control target key end

     0   :  { %10 = vsyncpa [#allocation4], 0  ;;  %s1240_s0 = inlined_call_operand.hbm [shape: bf16[16,128], index: 0, kind: input, shape index: {}]   ;;  %s1241_s1 = inlined_call_operand.hbm [shape: bf16[128,512], index: 1, kind: input, shape index: {}]   ;;  %s1242_s2 = inlined_call_operand.hbm [shape: f32[16,512], index: 2, kind: output, shape index: {0}]   ;;  %s1243_s3 = inlined_call_operand.vmem [shape: f32[2,16,1], index: 3, kind: output, shape index: {1}]   ;;  %s1244_s4 = inlined_call_operand.vmem [shape: f32[2,16,1], index: 4, kind: output, shape index: {2}]  }
   0x1   :  { %11 = vsyncpa [#allocation7], 0 }
   0x2   :  { %13 = vsyncpa [#allocation7 + $0x1], 0 }
   0x3   :  { %14 = vsyncpa [#allocation5], 0 }
   0x4   :  { %16 = vsyncpa [#allocation5 + $0x1], 0  ;;  %s993_s15 = smov 0   ;;  %s995_s16 = smov 0  }
   0x5   :  { %s997_s17 = smov 0   ;;  %s999_s18 = smov 0  }
   0x6   :  { %s1001_s19 = smov 0   ;;  %s1003_s20 = smov 0  }
   0x7 LB: > { %s661_s21 = sadd.s32 4294967295, %s954_s20   ;;  %s662_s22 = sadd.s32 4294967294, %s954_s20   ;;  %s954_s20 = sphi %s1003_s20, %s22_s20   ;;  %s950_s19 = sphi %s1001_s19, %s1270_s19   ;;  %s946_s18 = sphi %s999_s18, %s1269_s18   ;;  %s942_s17 = sphi %s997_s17, %s1268_s17   ;;  %s938_s16 = sphi %s995_s16, %s1267_s16   ;;  %s934_s15 = sphi %s993_s15, %s1266_s15  }
   0x8   : > { %p76_p0 = scmp.ne.s32.totalorder %s942_s17, %s938_s16  ;;  %p77_p1 = scmp.eq.s32.totalorder %s954_s20, 0 }
   0x9   : > { %p82_p2 = scmp.ne.s32.totalorder %s938_s16, %s934_s15  ;;  %p1030_p3 = scmp.eq.s32.totalorder %s661_s21, 0 }
   0xa   : > { %p1034_p4 = por %p77_p1, %p76_p0  ;;  %p106_p5 = scmp.eq.s32.totalorder %s661_s21, 1 }
   0xb   : > { %s1251_s23 = scalar_select %p1030_p3, 1, 0 }
   0xc   : > { %p1040_p6 = por %p1030_p3, %p82_p2  ;;  %p112_p7 = scmp.eq.s32.totalorder %s662_s22, 1 }
   0xd   : > { %p1044_p8 = por %p106_p5, %p76_p0  ;;  %p663_p9 = scmp.ge.s32.totalorder %s954_s20, 1 }
   0xe   : > { %s1253_s25 = scalar_select %p1040_p6, 1, 0 }
   0xf   : > { %s1254_s26 = scalar_select %p1044_p8, 1, 0 }
  0x10   : > { %p1049_p10 = por %p112_p7, %p82_p2  ;;  %p171_p11 = scmp.lt.s32.totalorder %s954_s20, 3 }
  0x11   : > { %s956_s29 = smov [#allocation3]   ;;  %p724_p1 = scmp.lt.s32.totalorder %s954_s20, 2 }
  0x12   : > { %s1255_s27 = scalar_select %p1049_p10, 1, 0 }
  0x13   : > { %p1054_p12 = pnand %p663_p9, %p171_p11  ;;  %s185_s30 = sshll.u32 %s956_s29, 4  ;;  %s1058_s30 = int_to_ptr.vmem [resolvable:$true] %s185_s30 }
  0x14   : > { %p1072_p2 = pnand %p724_p1, %p1034_p4  ;;  %s34_s7 = sadd.s32 1, %s950_s19 }
  0x15   : > { %s1256_s28 = scalar_select %p1054_p12, 1, 0 }
  0x16   : > { %p711_p13 = pneg %p1054_p12  ;;  %s810_s10 = scalar_lea.hbm %s1240_s0, 128 }
  0x17   : > { %s1258_s6 = scalar_select %p1072_p2, 1, 0 }
  0x18   : > { %p1066_p5 = pnand %p711_p13, %p1030_p3  ;;  %p811_p7 = scmp.ne.s32.totalorder %s1240_s0, %s810_s10 }
  0x19   : > { %p817_p4 = scmp.lt.u32.totalorder %s810_s10, %s1240_s0 }
  0x1a   : > { %p812_p9 = pneg %p1066_p5 }
  0x1c   : > { %p813_p11 = pnand %p812_p9, %p811_p7 }
  0x1e   : > { %p814_p13 = pneg %p813_p11 }
  0x20   : > { %p819_p1 = pnand %p817_p4, %p814_p13 }
  0x22   : > { %822 = shalt.err (!%p819_p1)
}
  0x23   : > { %s823_s21 = scalar_lea.vmem %s1058_s30, 128  ;;  %p831_p6 = scmp.lt.s32.totalorder %s1058_s30, %s1058_s30 }
  0x24   : > { %p824_p0 = scmp.ne.s32.totalorder %s1058_s30, %s823_s21  ;;  %p832_p3 = scmp.lt.s32.totalorder %s823_s21, %s823_s21 }
  0x26   : > { %p826_p10 = pnand %p824_p0, %p812_p9  ;;  %p833_p12 = por %p832_p3, %p831_p6 }
  0x28   : > { %p827_p8 = pneg %p826_p10 }
  0x2a   : > { %p834_p2 = pnand %p833_p12, %p827_p8 }
  0x2c   : > { %837 = shalt.err (!%p834_p2)
}
  0x2d   : > { %s957_s22 = smov 64   ;;  %s958_s24 = smov 4  }
  0x2e   : > { %714 = dma.hbm_to_vmem [thread:$0]  (!%p1066_p5), %s1240_s0, 128, %s1058_s30, [#allocation4], %s957_s22, %s957_s22, %s958_s24  }
  0x2f   : > { %p36_p10 = scmp.ge.s32.totalorder %s34_s7, 2  ;;  %s69_s9 = sadd.s32 1, %s942_s17 }
  0x30   : > { %s199_s10 = sand.u32 1, %s942_s17   ;;  %s699_s13 = sshll.u32 %s950_s19, 7 }
  0x31   : > { %s1272_s7 = smov (%p36_p10, %s34_s7), 0  ;;  %s666_s11 = sshll.u32 %s199_s10, 7 }
  0x32   : > { %s65_s12 = ssub.s32 %s950_s19, %s1272_s7  ;;  %s1108_s5 = scalar_lea.hbm %s1241_s1, %s699_s13 }
  0x33   : > { %p67_p3 = scmp.eq.s32.totalorder %s65_s12, 0  ;;  %s203_s30 = scalar_lea.vmem [#allocation6], %s666_s11 }
  0x34   : > { %s213_s22 = sshll.u32 %s203_s30, 4  ;;  %s1115_s29 = scalar_lea.sflag [#allocation7], %s199_s10  ;;  %s1113_s22 = int_to_ptr.vmem [resolvable:$true] %s213_s22 }
  0x35   : > { %s1111_s24 = scalar_select %p67_p3, %s942_s17, %s69_s9  }
  0x36   : > { %s838_s8 = scalar_lea.hbm %s1108_s5, 2048  ;;  %p1259_p8 = scmp.ne.s32.totalorder %s1258_s6, 0 }
  0x37   : > { %p839_p6 = scmp.ne.s32.totalorder %s1108_s5, %s838_s8  ;;  %s843_s14 = scalar_lea.hbm %s1241_s1, 4096 }
  0x38   : > { %p840_p12 = pneg %p1259_p8  ;;  %p844_p2 = scmp.lt.u32.totalorder %s1108_s5, %s1241_s1 }
  0x39   : > { %p845_p7 = scmp.lt.u32.totalorder %s843_s14, %s838_s8  ;;  %p847_p11 = scmp.lt.u32.totalorder %s838_s8, %s1108_s5 }
  0x3a   : > { %p841_p0 = pnand %p840_p12, %p839_p6 }
  0x3b   : > { %p846_p9 = por %p845_p7, %p844_p2 }
  0x3c   : > { %p842_p5 = pneg %p841_p0 }
  0x3d   : > { %p848_p13 = por %p847_p11, %p846_p9 }
  0x3f   : > { %p849_p4 = pnand %p848_p13, %p842_p5 }
  0x41   : > { %852 = shalt.err (!%p849_p4)
}
  0x42   : > { %s853_s9 = scalar_lea.vmem %s1113_s22, 2048  ;;  %s959_s10 = smov [#allocation6]  }
  0x43   : > { %p854_p1 = scmp.ne.s32.totalorder %s1113_s22, %s853_s9  ;;  %s858_s30 = sshll.u32 %s959_s10, 4  ;;  %s859_s30 = int_to_ptr.vmem [resolvable:$false] %s858_s30 }
  0x44   : > { %s860_s12 = scalar_lea.vmem %s859_s30, 4096  ;;  %p861_p6 = scmp.lt.s32.totalorder %s1113_s22, %s859_s30 }
  0x45   : > { %p856_p10 = pnand %p854_p1, %p840_p12  ;;  %p862_p0 = scmp.lt.s32.totalorder %s860_s12, %s853_s9 }
  0x47   : > { %p857_p3 = pneg %p856_p10  ;;  %p863_p2 = por %p862_p0, %p861_p6 }
  0x49   : > { %p864_p7 = pnand %p863_p2, %p857_p3 }
  0x4b   : > { %867 = shalt.err (!%p864_p7)
}
  0x4c   : > { %s960_s8 = smov 256   ;;  %s961_s13 = smov 128  }
  0x4d   : > { %s962_s14 = smov 8   ;;  %p1260_p12 = scmp.ne.s32.totalorder %s1256_s28, 0 }
  0x4e   : > { %718 = dma.hbm_to_vmem [thread:$0]  (!%p1259_p8), %s1108_s5, 2048, %s1113_s22, %s1115_s29, %s960_s8, %s961_s13, %s962_s14  }
  0x4f   : > { %225 = sbr.rel (%p1260_p12) target bundleno = 488 (0x1e8), region = 28  ;;  %p1261_p5 = scmp.ne.s32.totalorder (!%p1260_p12), %s1251_s23, 0 }
  0x56   : > { %921 = dma.done.wait (%p1261_p5), [#allocation4], 128  }
  0x57   : > { %923 = vsyncadd (%p1261_p5), [#allocation4], 4294967168  ;;  %s1150_s11 = sand.u32 1, %s938_s16   ;;  %p1262_p8 = scmp.ne.s32.totalorder %s1253_s25, 0 }
  0x58   : > { %s671_s21 = sshll.u32 %s1150_s11, 7  ;;  %s232_s9 = scalar_lea.sflag [#allocation7], %s1150_s11 }
  0x59   : > { %s1154_s10 = scalar_lea.vmem [#allocation6], %s671_s21 }
  0x5a   : > { %925 = dma.done.wait (%p1262_p8), %s232_s9, 2048  }
  0x5b   : > { %927 = vsyncadd (%p1262_p8), %s232_s9, 4294965248  ;;  %v963_v0 = vmov 0   ;;  %v785_v1 = vld [vmem:[%s1154_s10 + $0x4] ss:$8 sps:$4 sm:$0xff]   ;;  %v787_v2 = vld [vmem:[%s1154_s10] ss:$8 sps:$4 sm:$0xff]  }
  0x5c   : > { %432 = vmatprep.mubr.bf16.mxu0 %v963_v0  ;;  %400 = vmatprep.subr.bf16.mxu0 %v785_v1  ;;  %v788_v3 = vld [vmem:[%s1154_s10 + $0x14] ss:$8 sps:$4 sm:$0xff]   ;;  %v790_v4 = vld [vmem:[%s1154_s10 + $0x10] ss:$8 sps:$4 sm:$0xff]   ;;  %v791_v5 = vld [vmem:[%s1154_s10 + $0x24] ss:$8 sps:$4 sm:$0xff]  }
  0x5d   : > { %401 = vmatpush1.bf16.msra.mxu0 %v787_v2  ;;  %v793_v6 = vld [vmem:[%s1154_s10 + $0x20] ss:$8 sps:$4 sm:$0xff]   ;;  %v794_v7 = vld [vmem:[%s1154_s10 + $0x34] ss:$8 sps:$4 sm:$0xff]   ;;  %v796_v8 = vld [vmem:[%s1154_s10 + $0x30] ss:$8 sps:$4 sm:$0xff]  }
  0x5e   : > { %402 = vmatprep.subr.bf16.mxu0 %v788_v3  ;;  %v797_v9 = vld [vmem:[%s1154_s10 + $0x44] ss:$8 sps:$4 sm:$0xff]   ;;  %v799_v10 = vld [vmem:[%s1154_s10 + $0x40] ss:$8 sps:$4 sm:$0xff]   ;;  %v800_v11 = vld [vmem:[%s1154_s10 + $0x54] ss:$8 sps:$4 sm:$0xff]  }
  0x5f   : > { %v802_v12 = vld [vmem:[%s1154_s10 + $0x50] ss:$8 sps:$4 sm:$0xff]   ;;  %v803_v13 = vld [vmem:[%s1154_s10 + $0x64] ss:$8 sps:$4 sm:$0xff]   ;;  %v805_v14 = vld [vmem:[%s1154_s10 + $0x60] ss:$8 sps:$4 sm:$0xff]  }
  0x60   : > { %v806_v15 = vld [vmem:[%s1154_s10 + $0x74] ss:$8 sps:$4 sm:$0xff]   ;;  %v808_v16 = vld [vmem:[%s1154_s10 + $0x70] ss:$8 sps:$4 sm:$0xff]   ;;  %s672_s23 = sshll.u32 %s1150_s11, 5  ;;  %s702_s6 = sshll.u32 %s946_s18, 8 }
  0x61   : > { %403 = vmatpush1.bf16.msra.mxu0 %v790_v4  ;;  %v809_v17 = vld [vmem:[#allocation3] sm:$0xff]   ;;  %s255_s25 = scalar_lea.vmem [#allocation8], %s672_s23  ;;  %s1183_s29 = scalar_lea.hbm %s1242_s2, %s702_s6 }
  0x62   : > { %404 = vmatprep.subr.bf16.mxu0 %v791_v5  ;;  %s507_s28 = sshll.u32 %s255_s25, 4  ;;  %s484_s30 = scalar_lea.sflag [#allocation5], %s1150_s11  ;;  %s1177_s28 = int_to_ptr.vmem [resolvable:$true] %s507_s28 }
  0x63   : > { %s868_s12 = scalar_lea.vmem %s1177_s28, 512  ;;  %p1263_p11 = scmp.ne.s32.totalorder %s1254_s26, 0 }
  0x64   : > { %p869_p9 = scmp.ne.s32.totalorder %s1177_s28, %s868_s12  ;;  %s964_s8 = smov [#allocation8]  }
  0x65   : > { %405 = vmatpush1.bf16.msra.mxu0 %v793_v6  ;;  %s872_s13 = sshll.u32 %s964_s8, 4  ;;  %s873_s13 = int_to_ptr.vmem [resolvable:$false] %s872_s13 }
  0x66   : > { %406 = vmatprep.subr.bf16.mxu0 %v794_v7  ;;  %p870_p13 = pnand %p869_p9, %p1263_p11  ;;  %s874_s14 = scalar_lea.vmem %s873_s13, 1024 }
  0x67   : > { %p875_p1 = scmp.lt.s32.totalorder %s1177_s28, %s873_s13  ;;  %p876_p10 = scmp.lt.s32.totalorder %s874_s14, %s868_s12 }
  0x68   : > { %p871_p4 = pneg %p870_p13 }
  0x69   : > { %407 = vmatpush1.bf16.msra.mxu0 %v796_v8  ;;  %p877_p3 = por %p876_p10, %p875_p1 }
  0x6a   : > { %408 = vmatprep.subr.bf16.mxu0 %v797_v9 }
  0x6b   : > { %p878_p6 = pnand %p877_p3, %p871_p4 }
  0x6d   : > { %409 = vmatpush1.bf16.msra.mxu0 %v799_v10 }
  0x6e   : > { %410 = vmatprep.subr.bf16.mxu0 %v800_v11 }
  0x71   : > { %411 = vmatpush1.bf16.msra.mxu0 %v802_v12 }
  0x72   : > { %412 = vmatprep.subr.bf16.mxu0 %v803_v13 }
  0x75   : > { %413 = vmatpush1.bf16.msra.mxu0 %v805_v14 }
  0x76   : > { %414 = vmatprep.subr.bf16.mxu0 %v806_v15 }
  0x79   : > { %415 = vmatpush1.bf16.msra.mxu0 %v808_v16 }
  0x7c   : > { %433 = vmatmul.mubr.bf16.vlgmr.msra.gmra.mrb[0].mxu0 %v809_v17 }
 0x14f   : > { %v434_v18 = vpop.f32.mrb[0].mxu0 }
 0x150   : > { %458 = vst [vmem:[%s255_s25] sm:$0xff] %v434_v18  ;;  %v436_v19 = vpop.f32.mrb[1].mxu0  ;;  %v471_v20 = vmul.f32 %v434_v18, %v434_v18 }
 0x151   : > { %459 = vst [vmem:[%s255_s25 + $0x8] sm:$0xff] %v436_v19  ;;  %v438_v21 = vpop.f32.mrb[2].mxu0  ;;  %v462_v22 = vadd.f32 %v436_v19, %v434_v18  ;;  %v472_v23 = vmul.f32 %v436_v19, %v436_v19 }
 0x152   : > { %460 = vst [vmem:[%s255_s25 + $0x10] sm:$0xff] %v438_v21  ;;  %v440_v24 = vpop.f32.mrb[3].mxu0  ;;  %v473_v25 = vmul.f32 %v438_v21, %v438_v21 }
 0x153   : > { %461 = vst [vmem:[%s255_s25 + $0x18] sm:$0xff] %v440_v24  ;;  %v474_v26 = vmul.f32 %v440_v24, %v440_v24  ;;  %463 = vadd.xlane.f32.xlu0 %v462_v22  ;;  %v475_v27 = vadd.f32 %v472_v23, %v471_v20  ;;  %v465_v28 = vadd.f32 %v440_v24, %v438_v21 }
 0x155   : > { %476 = vadd.xlane.f32.xlu1 %v475_v27  ;;  %v478_v29 = vadd.f32 %v474_v26, %v473_v25 }
 0x157   : > { %466 = vadd.xlane.f32.xlu0 %v465_v28 }
 0x159   : > { %479 = vadd.xlane.f32.xlu1 %v478_v29 }
 0x15a   : > { %881 = shalt.err (!%p878_p6)
}
 0x15b   : > { %s882_s21 = scalar_lea.hbm %s1183_s29, 512  ;;  %s886_s23 = scalar_lea.hbm %s1242_s2, 1024 }
 0x15c   : > { %p883_p0 = scmp.ne.s32.totalorder %s1183_s29, %s882_s21  ;;  %p887_p12 = scmp.lt.u32.totalorder %s1183_s29, %s1242_s2 }
 0x15d   : > { %p888_p5 = scmp.lt.u32.totalorder %s886_s23, %s882_s21  ;;  %p890_p9 = scmp.lt.u32.totalorder %s882_s21, %s1183_s29 }
 0x15e   : > { %p884_p2 = pnand %p883_p0, %p1263_p11 }
 0x15f   : > { %p889_p8 = por %p888_p5, %p887_p12 }
 0x160   : > { %p885_p7 = pneg %p884_p2 }
 0x161   : > { %p891_p13 = por %p890_p9, %p889_p8 }
 0x163   : > { %p892_p4 = pnand %p891_p13, %p885_p7 }
 0x165   : > { %895 = shalt.err (!%p892_p4)
}
 0x166   : > { %s965_s5 = smov 256   ;;  %s966_s22 = smov 512   ;;  %vm468_vm0 = vcmask 7168  }
 0x167   : > { %s967_s12 = smov 16   ;;  %p273_p1 = scmp.lt.s32.totalorder %s946_s18, 1 }
 0x168   : > { %709 = dma.vmem_to_hbm [thread:$0]  (%p1263_p11), %s1177_s28, 512, %s1183_s29, %s484_s30, %s965_s5, %s966_s22, %s967_s12  }
 0x169   : > { %s1274_s18 = smov (!%p273_p1, %s946_s18), 1 }
 0x16a   : > { %s700_s8 = sshll.u32 %s1274_s18, 4 }
 0x16b   : > { %s277_s21 = scalar_lea.vmem %s1243_s3, %s700_s8  ;;  %s282_s23 = scalar_lea.vmem %s1244_s4, %s700_s8 }
 0x1e0   : > { %v464_v30 = vpop.xlane.xlu0 %463 }
 0x1e1   : > { %469 = vst.msk [vmem:[%s277_s21] sm:$0xff] %vm468_vm0, %v464_v30 }
 0x1e2   : > { %v477_v31 = vpop.xlane.xlu1 %476 }
 0x1e3   : > { %481 = vst.msk [vmem:[%s282_s23] sm:$0xff] %vm468_vm0, %v477_v31 }
 0x1e4   : > { %v467_v32 = vpop.xlane.xlu0 %466 }
 0x1e5   : > { %470 = vst.msk [vmem:[%s277_s21 + $0x8] sm:$0xff] %vm468_vm0, %v467_v32 }
 0x1e6   : > { %v480_v33 = vpop.xlane.xlu1 %479 }
 0x1e7   : > { %482 = vst.msk [vmem:[%s282_s23 + $0x8] sm:$0xff] %vm468_vm0, %v480_v33 }
 0x1e8 PF: > { %s528_s18 = sand.u32 1, %s934_s15   ;;  %p1264_p11 = scmp.ne.s32.totalorder %s1255_s27, 0 }
 0x1e9   : > { %p1265_p10 = scmp.ge.s32.totalorder %s954_s20, 2  ;;  %s529_s26 = scalar_lea.sflag [#allocation5], %s528_s18 }
 0x1eb   : > { %p720_p3 = pnand %p1265_p10, %p1264_p11 }
 0x1ed   : > { %929 = dma.done.wait (!%p720_p3), %s529_s26, 512  }
 0x1ee   : > { %931 = vsyncadd (!%p720_p3), %s529_s26, 4294966784  ;;  %s22_s20 = sadd.s32 1, %s954_s20   ;;  %s1266_s15 = smov %s938_s16 }
 0x1ef   : > { %p19_p6 = scmp.ge.s32.totalorder %s22_s20, 4   ;;  %s1267_s16 = smov %s942_s17 }
 0x1f0   : > { %s1268_s17 = smov %s1111_s24  ;;  %s1269_s18 = smov %s950_s19 }
 0x1f1   : > { %s1270_s19 = smov %s1272_s7  ;;  %21 = sbr.rel (!%p19_p6) target bundleno = 7 (0x7), region = 111 }
 0x1f8   :  { %550 = vsyncpa [#allocation4], 1 }
 0x1f9   :  { %552 = vsyncpa [#allocation4 + $0x1], 1 }
 0x1fa   :  { %553 = vsyncpa [#allocation7], 1 }
 0x1fb   :  { %555 = vsyncpa [#allocation7 + $0x1], 1 }
 0x1fc   :  { %556 = vsyncpa [#allocation5], 1 }
 0x1fd   :  { %558 = vsyncpa [#allocation5 + $0x1], 1 }

</bundles_post_ra>
